<compile_context>
chip_gen: v7x
topology: tpu7x:2x2x1
jax: 0.10.0
libtpu: 0.0.40
codegen_flags: <defaults>
</compile_context>

<pallas_src>
import jax
import jax.numpy as jnp
from jax.experimental import pallas as pl
from jax.experimental.pallas import tpu as pltpu


def _linkpred_kernel(x_ref, w_ref, b_ref, o_ref):
    # x_ref : (TM, K)  f32  VMEM — streaming row tile of the input
    # w_ref : (K, O)   f32  VMEM — grid-invariant (stays resident), pre-transposed
    # b_ref : (1, O)   f32  VMEM — grid-invariant
    # o_ref : (TM, O)        VMEM — output tile (unpadded last dim)
    z = jnp.dot(x_ref[...], w_ref[...], preferred_element_type=jnp.float32)
    z = z + b_ref[...]                       # bias broadcast over rows (VPU)
    # sigmoid(z) = 0.5 * tanh(0.5 * z) + 0.5 : single EUP push per vreg + VPU fma
    o_ref[...] = (0.5 * jnp.tanh(0.5 * z) + 0.5).astype(o_ref.dtype)


def _round_up(a, b):
    return (a + b - 1) // b * b


def _choose_row_tile(n):
    """Row-tile size: whole array when small; otherwise >=2 tiles (v7x megacore),
    multiple of 16 rows, capped at 8192 (double-buffered VMEM ~3 MiB)."""
    tm_max = 8192
    if n <= 2048:
        return n                       # block == full array dim → always legal
    return min(tm_max, _round_up(pl.cdiv(n, 2), 16))


@jax.jit
def link_pred_forward(x, weight, bias):
    """Forward of LinkPredModel: sigmoid(x @ weight.T + bias).

    x:      (N, input_dim)            f32
    weight: (output_dim, input_dim)   (torch nn.Linear layout)
    bias:   (output_dim,)
    """
    N, input_dim = x.shape
    output_dim = weight.shape[0]

    # One-time, tiny (K x O) transpose so the kernel contracts with a plain dot.
    w_t = weight.T.astype(jnp.float32)                       # (K, O)
    b2 = bias.astype(jnp.float32).reshape(1, output_dim)     # (1, O)

    tm = _choose_row_tile(N)
    grid = (pl.cdiv(N, tm),)

    cost = pl.CostEstimate(
        flops=2 * N * input_dim * output_dim + 4 * N * output_dim,
        transcendentals=N * output_dim,
        bytes_accessed=(N * input_dim * 4            # x (f32)
                        + input_dim * output_dim * 4  # W
                        + output_dim * 4              # bias
                        + N * output_dim * 4),        # out
    )

    return pl.pallas_call(
        _linkpred_kernel,
        out_shape=jax.ShapeDtypeStruct((N, output_dim), x.dtype),
        grid_spec=pltpu.PrefetchScalarGridSpec(
            num_scalar_prefetch=0,
            grid=grid,
            in_specs=[
                pl.BlockSpec((tm, input_dim), lambda i: (i, 0)),       # x streams
                pl.BlockSpec((input_dim, output_dim), lambda i: (0, 0)),  # W resident
                pl.BlockSpec((1, output_dim), lambda i: (0, 0)),          # bias resident
            ],
            out_specs=pl.BlockSpec((tm, output_dim), lambda i: (i, 0)),
        ),
        compiler_params=pltpu.CompilerParams(
            # Row tiles are independent — shard across TensorCores where available.
            dimension_semantics=("parallel",),
        ),
        cost_estimate=cost,
    )(x, w_t, b2)


if __name__ == "__main__":
    # Small shapes consistent with the module: a batch of edge-feature vectors.
    N = 8            # batch of node-pair feature rows
    input_dim = 32   # embedding/feature dim
    output_dim = 16  # prediction dim

    key = jax.random.PRNGKey(0)
    kx, kw, kb = jax.random.split(key, 3)

    # Deterministic parameter init mimicking nn.Linear default (uniform ±1/sqrt(fan_in)).
    bound = 1.0 / jnp.sqrt(jnp.float32(input_dim))
    weight = jax.random.uniform(kw, (output_dim, input_dim), jnp.float32, -bound, bound)
    bias = jax.random.uniform(kb, (output_dim,), jnp.float32, -bound, bound)

    x = jax.random.normal(kx, (N, input_dim), jnp.float32)

    out = jax.block_until_ready(link_pred_forward(x, weight, bias))

    # Pure-JAX f32 reference (matches the torch module semantics).
    z_ref = jnp.dot(x, weight.T) + bias
    ref = 1.0 / (1.0 + jnp.exp(-z_ref))

    assert out.shape == (N, output_dim)
    max_err = float(jnp.max(jnp.abs(out - ref)))
    assert jnp.allclose(out, ref, atol=1e-5, rtol=1e-5), f"max abs err = {max_err}"

    print("KERNEL_OK")
</pallas_src>

<mosaic_0001>
module attributes {stable_mosaic.version = 11 : i64} {
  func.func @_linkpred_kernel(%arg0: i32, %arg1: memref<8x32xf32, #tpu.memory_space<vmem>>, %arg2: memref<32x16xf32, #tpu.memory_space<vmem>>, %arg3: memref<1x16xf32, #tpu.memory_space<vmem>>, %arg4: memref<8x16xf32, #tpu.memory_space<vmem>>) attributes {dimension_semantics = [#tpu.dimension_semantics<parallel>], iteration_bounds = array<i64: 1>, scalar_prefetch = 0 : i64, scratch_operands = 0 : i64, tpu.core_type = #tpu.core_type<tc>, window_params = [{transform_indices = @transform_0, window_bounds = array<i64: 8, 32>}, {pipeline_mode = #tpu.pipeline_mode<synchronous>, transform_indices = @transform_1, window_bounds = array<i64: 32, 16>}, {pipeline_mode = #tpu.pipeline_mode<synchronous>, transform_indices = @transform_2, window_bounds = array<i64: 1, 16>}, {transform_indices = @transform_3, window_bounds = array<i64: 8, 16>}]} {
    %c0 = arith.constant 0 : index
    %c0_0 = arith.constant 0 : index
    %0 = vector.load %arg1[%c0, %c0_0] : memref<8x32xf32, #tpu.memory_space<vmem>>, vector<8x32xf32>
    %c0_1 = arith.constant 0 : index
    %c0_2 = arith.constant 0 : index
    %1 = vector.load %arg2[%c0_1, %c0_2] : memref<32x16xf32, #tpu.memory_space<vmem>>, vector<32x16xf32>
    %cst = arith.constant dense<0.000000e+00> : vector<8x16xf32>
    %2 = tpu.matmul %0, %1, %cst {dimension_numbers = #tpu.dot_dimension_numbers<[1], [0], [0], [1], [0, 0, 1, 1], [], []>} : vector<8x32xf32>, vector<32x16xf32>, vector<8x16xf32> -> vector<8x16xf32>
    %c0_3 = arith.constant 0 : index
    %c0_4 = arith.constant 0 : index
    %3 = vector.load %arg3[%c0_3, %c0_4] : memref<1x16xf32, #tpu.memory_space<vmem>>, vector<1x16xf32>
    %4 = vector.broadcast %3 : vector<1x16xf32> to vector<8x16xf32>
    %5 = arith.addf %2, %4 : vector<8x16xf32>
    %cst_5 = arith.constant 5.000000e-01 : f32
    %6 = vector.broadcast %cst_5 : f32 to vector<8x16xf32>
    %7 = arith.mulf %6, %5 : vector<8x16xf32>
    %8 = math.tanh %7 : vector<8x16xf32>
    %cst_6 = arith.constant 5.000000e-01 : f32
    %9 = vector.broadcast %cst_6 : f32 to vector<8x16xf32>
    %10 = arith.mulf %9, %8 : vector<8x16xf32>
    %cst_7 = arith.constant 5.000000e-01 : f32
    %11 = vector.broadcast %cst_7 : f32 to vector<8x16xf32>
    %12 = arith.addf %10, %11 : vector<8x16xf32>
    %c0_8 = arith.constant 0 : index
    %c0_9 = arith.constant 0 : index
    %13 = vector.load %arg4[%c0_8, %c0_9] : memref<8x16xf32, #tpu.memory_space<vmem>>, vector<8x16xf32>
    tpu.vector_store %arg4[%c0_8, %c0_9], %12 {strides = array<i32>} : memref<8x16xf32, #tpu.memory_space<vmem>>, vector<8x16xf32>,
    return
  }
  func.func @transform_0(%arg0: i32) -> (i32, i32) {
    %c0_i32 = arith.constant 0 : i32
    %c0_i32_0 = arith.constant 0 : i32
    return %arg0, %c0_i32 : i32, i32
  }
  func.func @transform_1(%arg0: i32) -> (i32, i32) {
    %c0_i32 = arith.constant 0 : i32
    %c0_i32_0 = arith.constant 0 : i32
    %c0_i32_1 = arith.constant 0 : i32
    return %c0_i32, %c0_i32_0 : i32, i32
  }
  func.func @transform_2(%arg0: i32) -> (i32, i32) {
    %c0_i32 = arith.constant 0 : i32
    %c0_i32_0 = arith.constant 0 : i32
    %c0_i32_1 = arith.constant 0 : i32
    return %c0_i32, %c0_i32_0 : i32, i32
  }
  func.func @transform_3(%arg0: i32) -> (i32, i32) {
    %c0_i32 = arith.constant 0 : i32
    %c0_i32_0 = arith.constant 0 : i32
    return %arg0, %c0_i32 : i32, i32
  }
}

</mosaic_0001>

<bundles_post_ra>
// kernel: link_pred_forward.1
= control target key start
LH: loop header
LB: loop body
LE: loop exit
PB: predicated region body
PF: predicated region fallthrough
CT: control target
= control target key end

     0   :  { %v175_v3 = vmov 0.0|0.0   ;;  %vm176_vm0 = vmmov 0   ;;  %v177_v6 = vmov 0.0   ;;  %s229_s0 = inlined_call_operand.vmem [shape: f32[8,32], index: 0, kind: input, shape index: {}]   ;;  %s230_s1 = inlined_call_operand.vmem [shape: f32[32,16], index: 1, kind: input, shape index: {}]   ;;  %s231_s2 = inlined_call_operand.vmem [shape: f32[1,16], index: 2, kind: input, shape index: {}]   ;;  %s232_s3 = inlined_call_operand.hbm [shape: f32[8,16], index: 3, kind: output, shape index: {}]  }
   0x1   :  { %v16_v0 = vld [vmem:[%s230_s1] sm:$0xff]  ;;  %v17_v1 = vld [vmem:[%s230_s1 + $0x8] sm:$0xff]  ;;  %v18_v2 = vld [vmem:[%s230_s1 + $0x10] sm:$0xff]  ;;  %139 = vmatprep.subr.bf16.mxu0 %v175_v3  ;;  %136 = vmatprep.mubr.msk.f32.mxu0 %vm176_vm0, %v177_v6 }
   0x2   :  { %v140_v4 = vpack.c.bf16 %v17_v1, %v16_v0  ;;  %v19_v5 = vld [vmem:[%s230_s1 + $0x18] sm:$0xff] }
   0x3   :  { %8 = vsyncpa [#allocation3], 0  ;;  %v143_v7 = vpack.c.bf16 %v19_v5, %v18_v2  ;;  %v15_v8 = vld [vmem:[%s229_s0] sm:$0xff]  ;;  %vm27_vm1 = vcmask 261120   ;;  %s178_s1 = smov [#allocation2]   ;;  %vm105_vm2 = vcmask 130048  }
   0x4   :  { %141 = vmatpush3.bf16.msra.mxu0 %v140_v4  ;;  %v121_v9 = vld [vmem:[%s231_s2] ss:$0 sm:$0xff]  ;;  %s113_s24 = sshll.u32 %s178_s1, 4  ;;  %s114_s24 = int_to_ptr.vmem [resolvable:$true] %s113_s24 }
   0x5   :  { %142 = vmatprep.subr.bf16.mxu0 %v175_v3  ;;  %s151_s0 = scalar_lea.vmem %s114_s24, 128  ;;  %p156_p1 = scmp.lt.s32.totalorder %s114_s24, %s114_s24 }
   0x6   :  { %p152_p0 = scmp.ne.s32.totalorder %s114_s24, %s151_s0  ;;  %p157_p2 = scmp.lt.s32.totalorder %s151_s0, %s151_s0 }
   0x8   :  { %144 = vmatpush3.bf16.msra.mxu0 %v143_v7  ;;  %p158_p3 = por %p157_p2, %p156_p1 }
   0xa   :  { %p159_p4 = pnand %p158_p3, %p152_p0 }
   0xb   :  { %137 = vmatmul.mubr.msk.f32.vlgmr.msra.gmra.mrb[0].mxu0 %vm27_vm1, %v15_v8 }
  0xde   :  { %v97_v10 = vpop.f32.mrb[0].mxu0 }
  0xdf   :  { %v98_v11 = vadd.f32 %v121_v9, %v97_v10  ;;  %v138_v12 = vpop.f32.mrb[1].mxu0 }
  0xe1   :  { %v101_v13 = vmul.f32 0.5, %v98_v11 }
  0xe3   :  { %149 = vtanh.f32 %v101_v13 }
  0xed   :  { %v150_v14 = vpop.eup %149 }
  0xee   :  { %v103_v15 = vmul.f32 0.5, %v150_v14 }
  0xf0   :  { %v104_v16 = vadd.f32 0.5, %v103_v15 }
  0xf2   :  { %106 = vst.msk [vmem:[#allocation2] sm:$0xff] %vm105_vm2, %v104_v16 }
  0xf3   :  { %162 = shalt.err (!%p159_p4)
}
  0xf4   :  { %s163_s26 = scalar_lea.hbm %s232_s3, 128 }
  0xf5   :  { %p164_p5 = scmp.ne.s32.totalorder %s232_s3, %s163_s26  ;;  %p167_p6 = scmp.lt.u32.totalorder %s163_s26, %s232_s3 }
  0xf7   :  { %p169_p7 = pnand %p167_p6, %p164_p5 }
  0xf9   :  { %172 = shalt.err (!%p169_p7)
}
  0xfa   :  { %116 = dma.vmem_to_hbm [thread:$0]  %s114_s24, 128, %s232_s3, [#allocation3]  }
  0xfb   :  { %173 = dma.done.wait [#allocation3], 128  }
  0xfc   :  { %174 = vsyncadd [#allocation3], 4294967168 }
  0xfd   :  { %120 = vsyncpa [#allocation3], 1 }

</bundles_post_ra>
